<compile_context>
chip_gen: v6e
topology: v6e:2x2x1
jax: 0.10.0
libtpu: 0.0.40
codegen_flags: <defaults>
</compile_context>

<pallas_src>
import functools

import jax
import jax.numpy as jnp
from jax.experimental import pallas as pl
from jax.experimental.pallas import tpu as pltpu

LANE = 128
NEG_BIG = -1e30  # finite "minus infinity" for padded softmax lanes


def _round_up(n, m):
    return (n + m - 1) // m * m


def gating_kernel(scale_ref,                      # (1,) f32 in SMEM
                  x_ref,                          # (TB, in) tile, caller dtype
                  w0_ref, b0_ref,
                  w1_ref, b1_ref,
                  w2_ref, b2_ref,
                  w3_ref, b3_ref,                 # w3/b3: 1/T folded, lane-padded
                  o_ref,                          # (TB, out_features) f32 tile
                  *, out_features):
    # Cast the activation tile to bf16 on the VPU (hidden under DMA).
    x = x_ref[...].astype(jnp.bfloat16)
    # Hidden layer 0 (bf16 MXU, f32 accumulate; bias + ReLU in f32)
    h = jnp.dot(x, w0_ref[...], preferred_element_type=jnp.float32)
    h = jnp.maximum(h + b0_ref[...], 0.0)
    # Hidden layer 1
    h = jnp.dot(h.astype(jnp.bfloat16), w1_ref[...],
                preferred_element_type=jnp.float32)
    h = jnp.maximum(h + b1_ref[...], 0.0)
    # Hidden layer 2
    h = jnp.dot(h.astype(jnp.bfloat16), w2_ref[...],
                preferred_element_type=jnp.float32)
    h = jnp.maximum(h + b2_ref[...], 0.0)
    # Output layer: 1/temperature already folded into w3/b3; padded lanes get
    # a -1e30 bias so they contribute exactly 0 to the softmax.
    logits = jnp.dot(h.astype(jnp.bfloat16), w3_ref[...],
                     preferred_element_type=jnp.float32)
    logits = logits + b3_ref[...]

    # Numerically stable softmax over the lane axis (padded lanes -> 0).
    z = logits - jnp.max(logits, axis=-1, keepdims=True)
    e = jnp.exp(z)
    # Fold logit_scale into the EUP approximate reciprocal (one (tb,1) mul).
    inv = pl.reciprocal(jnp.sum(e, axis=-1, keepdims=True), approx=True)
    inv = inv * scale_ref[0]

    # Store only the real output columns (narrow, contiguous HBM write).
    o_ref[...] = (e[:, :out_features] * inv).astype(o_ref.dtype)


def _prepare_weights(params, temperature):
    """Exact weight arrays handed to the kernel (casts, 1/T fold, lane padding)."""
    inv_t = 1.0 / float(temperature)
    out_features = params["w3"].shape[1]
    out_pad = _round_up(out_features, LANE)

    # Fold 1/temperature into the output layer (exact: linear pre-softmax).
    w3 = params["w3"].astype(jnp.float32) * inv_t
    b3 = params["b3"].astype(jnp.float32) * inv_t
    # Lane-padded logits: pad to 128 columns; padded bias lanes -> -1e30.
    w3 = jnp.pad(w3, ((0, 0), (0, out_pad - out_features)))
    b3 = jnp.pad(b3, ((0, 0), (0, out_pad - out_features)),
                 constant_values=NEG_BIG)

    ops = dict(
        w0=params["w0"].astype(jnp.bfloat16),
        b0=params["b0"].astype(jnp.float32),
        w1=params["w1"].astype(jnp.bfloat16),
        b1=params["b1"].astype(jnp.float32),
        w2=params["w2"].astype(jnp.bfloat16),
        b2=params["b2"].astype(jnp.float32),
        w3=w3.astype(jnp.bfloat16),
        b3=b3,
        scale=params["logit_scale"].astype(jnp.float32).reshape((1,)),
    )
    return ops, out_features, out_pad


@functools.partial(jax.jit, static_argnames=("temperature", "block_rows"))
def gating_network_forward(x, params, *, temperature: float,
                           block_rows: int = 4096):
    """x: [B, in_features].  Returns [B, out_features] f32."""
    B, in_features = x.shape
    hidden = params["w0"].shape[1]
    ops, out_features, out_pad = _prepare_weights(params, temperature)

    # Batch tiling: big tiles to amortize per-step overhead, but keep >=2 grid
    # tiles (when B allows) so v7x's two TensorCores both get work.  Ragged
    # last block handled by Pallas (no wrapper-side pad / slice).
    tb = min(block_rows, _round_up(pl.cdiv(B, 2), 16))
    tb = _round_up(max(tb, 8), 8)
    grid = (pl.cdiv(B, tb),)

    const = lambda i: (0, 0)           # weights/biases resident across grid
    tile = lambda i: (i, 0)            # batch-tiled x / out

    # NOTE: constant weight/bias blocks could use pipeline_mode=pl.Buffered(1)
    # (single-buffered) for large hidden dims on v7x's 64 MiB VMEM; irrelevant
    # at hidden=32, so left at the default here.
    in_specs = [
        pl.BlockSpec(memory_space=pltpu.MemorySpace.SMEM),   # logit_scale (1,)
        pl.BlockSpec((tb, in_features), tile),               # x tile (caller dtype)
        pl.BlockSpec((in_features, hidden), const), pl.BlockSpec((1, hidden), const),
        pl.BlockSpec((hidden, hidden), const),      pl.BlockSpec((1, hidden), const),
        pl.BlockSpec((hidden, hidden), const),      pl.BlockSpec((1, hidden), const),
        pl.BlockSpec((hidden, out_pad), const),     pl.BlockSpec((1, out_pad), const),
    ]
    out_spec = pl.BlockSpec((tb, out_features), tile)

    weight_bytes = sum(
        ops[k].size * ops[k].dtype.itemsize
        for k in ("w0", "b0", "w1", "b1", "w2", "b2", "w3", "b3"))
    cost = pl.CostEstimate(
        flops=2 * B * (in_features * hidden + 2 * hidden * hidden
                       + hidden * out_pad),
        transcendentals=B * out_pad + B,
        bytes_accessed=(B * in_features * x.dtype.itemsize     # x read
                        + B * out_features * 4                  # narrow f32 out
                        + weight_bytes + 4),
    )

    kernel = functools.partial(gating_kernel, out_features=out_features)

    out = pl.pallas_call(
        kernel,
        out_shape=jax.ShapeDtypeStruct((B, out_features), jnp.float32),
        grid=grid,
        in_specs=in_specs,
        out_specs=out_spec,
        compiler_params=pltpu.CompilerParams(
            dimension_semantics=("parallel",)),
        cost_estimate=cost,
    )(ops["scale"], x,
      ops["w0"], ops["b0"],
      ops["w1"], ops["b1"],
      ops["w2"], ops["b2"],
      ops["w3"], ops["b3"])
    return out


def init_params(key, in_features, hidden_dim, out_features, logit_scale=1.0):
    """Deterministic synthetic parameters (pre-transposed to [in, out])."""
    keys = jax.random.split(key, 8)
    dims = [(in_features, hidden_dim),
            (hidden_dim, hidden_dim),
            (hidden_dim, hidden_dim),
            (hidden_dim, out_features)]
    params = {}
    for i, (fan_in, fan_out) in enumerate(dims):
        bound = 1.0 / jnp.sqrt(fan_in)
        params[f"w{i}"] = jax.random.uniform(
            keys[2 * i], (fan_in, fan_out), jnp.float32, -bound, bound)
        params[f"b{i}"] = jax.random.uniform(
            keys[2 * i + 1], (1, fan_out), jnp.float32, -bound, bound)
    params["logit_scale"] = jnp.ones((1,), jnp.float32) * logit_scale
    return params


def gating_network_matched_ref(x, params, *, temperature: float):
    """Pure-JAX reference that mirrors the kernel's numerics (bf16 dots, fold)."""
    ops, out_features, _ = _prepare_weights(params, temperature)
    h = x.astype(jnp.bfloat16)
    h = jnp.maximum(jnp.dot(h, ops["w0"],
                            preferred_element_type=jnp.float32) + ops["b0"], 0.0)
    h = jnp.maximum(jnp.dot(h.astype(jnp.bfloat16), ops["w1"],
                            preferred_element_type=jnp.float32) + ops["b1"], 0.0)
    h = jnp.maximum(jnp.dot(h.astype(jnp.bfloat16), ops["w2"],
                            preferred_element_type=jnp.float32) + ops["b2"], 0.0)
    logits = jnp.dot(h.astype(jnp.bfloat16), ops["w3"],
                     preferred_element_type=jnp.float32) + ops["b3"]
    sm = jax.nn.softmax(logits, axis=-1)
    return (sm * ops["scale"][0])[:, :out_features]


def gating_network_module_ref(x, params, *, temperature: float):
    """Pure-f32 reference of the original PyTorch forward."""
    h = x
    for i in range(3):
        h = jnp.maximum(h @ params[f"w{i}"] + params[f"b{i}"], 0.0)
    logits = h @ params["w3"] + params["b3"]
    sm = jax.nn.softmax(logits / temperature, axis=1)
    return sm * params["logit_scale"][0]


if __name__ == "__main__":
    # Small shapes consistent with the module's forward; batch chosen so both
    # the multi-tile path (block_rows=8 -> grid=2, ragged last block) and the
    # default single-tile ragged path are exercised.
    batch, in_features, hidden_dim, out_features = 10, 32, 32, 4
    temperature = 10.0

    key = jax.random.PRNGKey(0)
    kx, kp = jax.random.split(key)
    x = jax.random.normal(kx, (batch, in_features), jnp.float32)
    params = init_params(kp, in_features, hidden_dim, out_features,
                         logit_scale=1.0)

    # Multi-tile + ragged last block (grid=(2,), last tile half valid).
    out = gating_network_forward(x, params, temperature=temperature,
                                 block_rows=8)
    out = jax.block_until_ready(out)
    assert out.shape == (batch, out_features)

    # Default tiling path (single ragged tile covering the whole batch).
    out2 = gating_network_forward(x, params, temperature=temperature)
    out2 = jax.block_until_ready(out2)
    assert out2.shape == (batch, out_features)

    # Tight check against a reference with matching numerics (bf16 dots,
    # folded temperature); slack only for the approx reciprocal.
    ref_matched = gating_network_matched_ref(x, params, temperature=temperature)
    assert jnp.allclose(out, ref_matched, atol=2e-3, rtol=2e-3), \
        "mismatch vs matched reference (multi-tile)"
    assert jnp.allclose(out2, ref_matched, atol=2e-3, rtol=2e-3), \
        "mismatch vs matched reference (default tiling)"

    # Loose semantic check against the pure-f32 module reference.
    ref_module = gating_network_module_ref(x, params, temperature=temperature)
    assert jnp.allclose(out, ref_module, atol=5e-2, rtol=5e-2), \
        "mismatch vs f32 module reference"

    print("KERNEL_OK")
</pallas_src>

<mosaic_0001>
module attributes {stable_mosaic.version = 11 : i64} {
  func.func @gating_kernel(%arg0: i32, %arg1: memref<1xf32, #tpu.memory_space<smem>>, %arg2: memref<8x32xf32, #tpu.memory_space<vmem>>, %arg3: memref<32x32xbf16, #tpu.memory_space<vmem>>, %arg4: memref<1x32xf32, #tpu.memory_space<vmem>>, %arg5: memref<32x32xbf16, #tpu.memory_space<vmem>>, %arg6: memref<1x32xf32, #tpu.memory_space<vmem>>, %arg7: memref<32x32xbf16, #tpu.memory_space<vmem>>, %arg8: memref<1x32xf32, #tpu.memory_space<vmem>>, %arg9: memref<32x128xbf16, #tpu.memory_space<vmem>>, %arg10: memref<1x128xf32, #tpu.memory_space<vmem>>, %arg11: memref<8x4xf32, #tpu.memory_space<vmem>>) attributes {dimension_semantics = [#tpu.dimension_semantics<parallel>], iteration_bounds = array<i64: 2>, scalar_prefetch = 0 : i64, scratch_operands = 0 : i64, tpu.core_type = #tpu.core_type<tc>, window_params = [{transform_indices = @transform_0, window_bounds = array<i64: 1>}, {transform_indices = @transform_1, window_bounds = array<i64: 8, 32>}, {pipeline_mode = #tpu.pipeline_mode<synchronous>, transform_indices = @transform_2, window_bounds = array<i64: 32, 32>}, {pipeline_mode = #tpu.pipeline_mode<synchronous>, transform_indices = @transform_3, window_bounds = array<i64: 1, 32>}, {pipeline_mode = #tpu.pipeline_mode<synchronous>, transform_indices = @transform_4, window_bounds = array<i64: 32, 32>}, {pipeline_mode = #tpu.pipeline_mode<synchronous>, transform_indices = @transform_5, window_bounds = array<i64: 1, 32>}, {pipeline_mode = #tpu.pipeline_mode<synchronous>, transform_indices = @transform_6, window_bounds = array<i64: 32, 32>}, {pipeline_mode = #tpu.pipeline_mode<synchronous>, transform_indices = @transform_7, window_bounds = array<i64: 1, 32>}, {pipeline_mode = #tpu.pipeline_mode<synchronous>, transform_indices = @transform_8, window_bounds = array<i64: 32, 128>}, {pipeline_mode = #tpu.pipeline_mode<synchronous>, transform_indices = @transform_9, window_bounds = array<i64: 1, 128>}, {transform_indices = @transform_10, window_bounds = array<i64: 8, 4>}]} {
    %c0 = arith.constant 0 : index
    %c0_0 = arith.constant 0 : index
    %0 = vector.load %arg2[%c0, %c0_0] : memref<8x32xf32, #tpu.memory_space<vmem>>, vector<8x32xf32>
    %1 = arith.truncf %0 : vector<8x32xf32> to vector<8x32xbf16>
    %c0_1 = arith.constant 0 : index
    %c0_2 = arith.constant 0 : index
    %2 = vector.load %arg3[%c0_1, %c0_2] : memref<32x32xbf16, #tpu.memory_space<vmem>>, vector<32x32xbf16>
    %cst = arith.constant dense<0.000000e+00> : vector<8x32xf32>
    %3 = tpu.matmul %1, %2, %cst {dimension_numbers = #tpu.dot_dimension_numbers<[1], [0], [0], [1], [0, 0, 1, 1], [], []>} : vector<8x32xbf16>, vector<32x32xbf16>, vector<8x32xf32> -> vector<8x32xf32>
    %c0_3 = arith.constant 0 : index
    %c0_4 = arith.constant 0 : index
    %4 = vector.load %arg4[%c0_3, %c0_4] : memref<1x32xf32, #tpu.memory_space<vmem>>, vector<1x32xf32>
    %5 = vector.broadcast %4 : vector<1x32xf32> to vector<8x32xf32>
    %6 = arith.addf %3, %5 : vector<8x32xf32>
    %cst_5 = arith.constant 0.000000e+00 : f32
    %7 = vector.broadcast %cst_5 : f32 to vector<8x32xf32>
    %8 = arith.maximumf %6, %7 : vector<8x32xf32>
    %9 = arith.truncf %8 : vector<8x32xf32> to vector<8x32xbf16>
    %c0_6 = arith.constant 0 : index
    %c0_7 = arith.constant 0 : index
    %10 = vector.load %arg5[%c0_6, %c0_7] : memref<32x32xbf16, #tpu.memory_space<vmem>>, vector<32x32xbf16>
    %cst_8 = arith.constant dense<0.000000e+00> : vector<8x32xf32>
    %11 = tpu.matmul %9, %10, %cst_8 {dimension_numbers = #tpu.dot_dimension_numbers<[1], [0], [0], [1], [0, 0, 1, 1], [], []>} : vector<8x32xbf16>, vector<32x32xbf16>, vector<8x32xf32> -> vector<8x32xf32>
    %c0_9 = arith.constant 0 : index
    %c0_10 = arith.constant 0 : index
    %12 = vector.load %arg6[%c0_9, %c0_10] : memref<1x32xf32, #tpu.memory_space<vmem>>, vector<1x32xf32>
    %13 = vector.broadcast %12 : vector<1x32xf32> to vector<8x32xf32>
    %14 = arith.addf %11, %13 : vector<8x32xf32>
    %cst_11 = arith.constant 0.000000e+00 : f32
    %15 = vector.broadcast %cst_11 : f32 to vector<8x32xf32>
    %16 = arith.maximumf %14, %15 : vector<8x32xf32>
    %17 = arith.truncf %16 : vector<8x32xf32> to vector<8x32xbf16>
    %c0_12 = arith.constant 0 : index
    %c0_13 = arith.constant 0 : index
    %18 = vector.load %arg7[%c0_12, %c0_13] : memref<32x32xbf16, #tpu.memory_space<vmem>>, vector<32x32xbf16>
    %cst_14 = arith.constant dense<0.000000e+00> : vector<8x32xf32>
    %19 = tpu.matmul %17, %18, %cst_14 {dimension_numbers = #tpu.dot_dimension_numbers<[1], [0], [0], [1], [0, 0, 1, 1], [], []>} : vector<8x32xbf16>, vector<32x32xbf16>, vector<8x32xf32> -> vector<8x32xf32>
    %c0_15 = arith.constant 0 : index
    %c0_16 = arith.constant 0 : index
    %20 = vector.load %arg8[%c0_15, %c0_16] : memref<1x32xf32, #tpu.memory_space<vmem>>, vector<1x32xf32>
    %21 = vector.broadcast %20 : vector<1x32xf32> to vector<8x32xf32>
    %22 = arith.addf %19, %21 : vector<8x32xf32>
    %cst_17 = arith.constant 0.000000e+00 : f32
    %23 = vector.broadcast %cst_17 : f32 to vector<8x32xf32>
    %24 = arith.maximumf %22, %23 : vector<8x32xf32>
    %25 = arith.truncf %24 : vector<8x32xf32> to vector<8x32xbf16>
    %c0_18 = arith.constant 0 : index
    %c0_19 = arith.constant 0 : index
    %26 = vector.load %arg9[%c0_18, %c0_19] : memref<32x128xbf16, #tpu.memory_space<vmem>>, vector<32x128xbf16>
    %cst_20 = arith.constant dense<0.000000e+00> : vector<8x128xf32>
    %27 = tpu.matmul %25, %26, %cst_20 {dimension_numbers = #tpu.dot_dimension_numbers<[1], [0], [0], [1], [0, 0, 1, 1], [], []>} : vector<8x32xbf16>, vector<32x128xbf16>, vector<8x128xf32> -> vector<8x128xf32>
    %c0_21 = arith.constant 0 : index
    %c0_22 = arith.constant 0 : index
    %28 = vector.load %arg10[%c0_21, %c0_22] : memref<1x128xf32, #tpu.memory_space<vmem>>, vector<1x128xf32>
    %29 = vector.broadcast %28 : vector<1x128xf32> to vector<8x128xf32>
    %30 = arith.addf %27, %29 : vector<8x128xf32>
    %cst_23 = arith.constant dense<0xFF800000> : vector<8xf32>
    %31 = vector.multi_reduction <maximumf>, %30, %cst_23 [1] : vector<8x128xf32> to vector<8xf32>
    %32 = vector.shape_cast %31 : vector<8xf32> to vector<8x1xf32>
    %33 = vector.broadcast %32 : vector<8x1xf32> to vector<8x128xf32>
    %34 = arith.subf %30, %33 : vector<8x128xf32>
    %35 = math.exp %34 : vector<8x128xf32>
    %cst_24 = arith.constant dense<0.000000e+00> : vector<8xf32>
    %36 = vector.multi_reduction <add>, %35, %cst_24 [1] : vector<8x128xf32> to vector<8xf32>
    %37 = vector.shape_cast %36 : vector<8xf32> to vector<8x1xf32>
    %38 = tpu.reciprocal %37 {approx = true} : vector<8x1xf32> -> vector<8x1xf32>
    %c0_25 = arith.constant 0 : index
    %39 = memref.load %arg1[%c0_25] : memref<1xf32, #tpu.memory_space<smem>>
    %40 = vector.broadcast %39 : f32 to vector<8x1xf32>
    %41 = arith.mulf %38, %40 : vector<8x1xf32>
    %42 = vector.extract_strided_slice %35 {offsets = [0, 0], sizes = [8, 4], strides = [1, 1]} : vector<8x128xf32> to vector<8x4xf32>
    %43 = vector.broadcast %41 : vector<8x1xf32> to vector<8x4xf32>
    %44 = arith.mulf %42, %43 : vector<8x4xf32>
    %c0_26 = arith.constant 0 : index
    %c0_27 = arith.constant 0 : index
    %45 = vector.load %arg11[%c0_26, %c0_27] : memref<8x4xf32, #tpu.memory_space<vmem>>, vector<8x4xf32>
    tpu.vector_store %arg11[%c0_26, %c0_27], %44 {strides = array<i32>} : memref<8x4xf32, #tpu.memory_space<vmem>>, vector<8x4xf32>,
    return
  }
  func.func @transform_0(%arg0: i32) -> i32 {
    %c0_i32 = arith.constant 0 : i32
    %c0_i32_0 = arith.constant 0 : i32
    return %c0_i32 : i32
  }
  func.func @transform_1(%arg0: i32) -> (i32, i32) {
    %c0_i32 = arith.constant 0 : i32
    %c0_i32_0 = arith.constant 0 : i32
    return %arg0, %c0_i32 : i32, i32
  }
  func.func @transform_2(%arg0: i32) -> (i32, i32) {
    %c0_i32 = arith.constant 0 : i32
    %c0_i32_0 = arith.constant 0 : i32
    %c0_i32_1 = arith.constant 0 : i32
    return %c0_i32, %c0_i32_0 : i32, i32
  }
  func.func @transform_3(%arg0: i32) -> (i32, i32) {
    %c0_i32 = arith.constant 0 : i32
    %c0_i32_0 = arith.constant 0 : i32
    %c0_i32_1 = arith.constant 0 : i32
    return %c0_i32, %c0_i32_0 : i32, i32
  }
  func.func @transform_4(%arg0: i32) -> (i32, i32) {
    %c0_i32 = arith.constant 0 : i32
    %c0_i32_0 = arith.constant 0 : i32
    %c0_i32_1 = arith.constant 0 : i32
    return %c0_i32, %c0_i32_0 : i32, i32
  }
  func.func @transform_5(%arg0: i32) -> (i32, i32) {
    %c0_i32 = arith.constant 0 : i32
    %c0_i32_0 = arith.constant 0 : i32
    %c0_i32_1 = arith.constant 0 : i32
    return %c0_i32, %c0_i32_0 : i32, i32
  }
  func.func @transform_6(%arg0: i32) -> (i32, i32) {
    %c0_i32 = arith.constant 0 : i32
    %c0_i32_0 = arith.constant 0 : i32
    %c0_i32_1 = arith.constant 0 : i32
    return %c0_i32, %c0_i32_0 : i32, i32
  }
  func.func @transform_7(%arg0: i32) -> (i32, i32) {
    %c0_i32 = arith.constant 0 : i32
    %c0_i32_0 = arith.constant 0 : i32
    %c0_i32_1 = arith.constant 0 : i32
    return %c0_i32, %c0_i32_0 : i32, i32
  }
  func.func @transform_8(%arg0: i32) -> (i32, i32) {
    %c0_i32 = arith.constant 0 : i32
    %c0_i32_0 = arith.constant 0 : i32
    %c0_i32_1 = arith.constant 0 : i32
    return %c0_i32, %c0_i32_0 : i32, i32
  }
  func.func @transform_9(%arg0: i32) -> (i32, i32) {
    %c0_i32 = arith.constant 0 : i32
    %c0_i32_0 = arith.constant 0 : i32
    %c0_i32_1 = arith.constant 0 : i32
    return %c0_i32, %c0_i32_0 : i32, i32
  }
  func.func @transform_10(%arg0: i32) -> (i32, i32) {
    %c0_i32 = arith.constant 0 : i32
    %c0_i32_0 = arith.constant 0 : i32
    return %arg0, %c0_i32 : i32, i32
  }
}

</mosaic_0001>

<bundles_post_ra>
// kernel: gating_network_forward.1
= control target key start
LH: loop header
LB: loop body
LE: loop exit
PB: predicated region body
PF: predicated region fallthrough
CT: control target
= control target key end

     0   :  { %s856_s15 = smov 0   ;;  %s924_s0 = inlined_call_operand.<no memory space> [shape: f32[1], index: 0, kind: input, shape index: {}]   ;;  %s925_s1 = inlined_call_operand.vmem [shape: f32[10,32], index: 1, kind: input, shape index: {}]   ;;  %s926_s2 = inlined_call_operand.vmem [shape: bf16[32,32], index: 2, kind: input, shape index: {}]   ;;  %s927_s3 = inlined_call_operand.vmem [shape: f32[1,32], index: 3, kind: input, shape index: {}]   ;;  %s928_s4 = inlined_call_operand.vmem [shape: bf16[32,32], index: 4, kind: input, shape index: {}]   ;;  %s929_s5 = inlined_call_operand.vmem [shape: f32[1,32], index: 5, kind: input, shape index: {}]   ;;  %s930_s6 = inlined_call_operand.vmem [shape: bf16[32,32], index: 6, kind: input, shape index: {}]   ;;  %s931_s7 = inlined_call_operand.vmem [shape: f32[1,32], index: 7, kind: input, shape index: {}]   ;;  %s932_s8 = inlined_call_operand.vmem [shape: bf16[32,128], index: 8, kind: input, shape index: {}]   ;;  %s933_s9 = inlined_call_operand.vmem [shape: f32[1,128], index: 9, kind: input, shape index: {}]   ;;  %s934_s10 = inlined_call_operand.vmem [shape: f32[10,4], index: 10, kind: output, shape index: {}]  }
   0x1   :  { %15 = sst [smem:[#allocation2]] %s924_s0 }
   0x2 LB: > { %s697_s16 = sadd.s32 4294967295, %s794_s15   ;;  %p701_p0 = scmp.ge.s32.totalorder %s794_s15, 1  ;;  %s794_s15 = sphi %s856_s15, %s21_s15  }
   0x3   : > { %p312_p1 = scmp.lt.s32.totalorder %s794_s15, 3 }
   0x5   : > { %p313_p2 = pnand %p701_p0, %p312_p1 }
   0x6   : > { %p348_p3 = scmp.lt.s32.totalorder (!%p313_p2), %s697_s16, 1  ;;  %s638_s26 = sld [smem:[#allocation2]] (!%p313_p2) }
   0x7   : > { %316 = sbr.rel (%p313_p2) target bundleno = 1126 (0x466), region = 60 }
   0xc   : > { %v776_v0 = vld [vmem:[%s926_s2 + $0x8] sm:$0xff]   ;;  %v796_v1 = vmov 0.0   ;;  %v777_v2 = vld [vmem:[%s926_s2] sm:$0xff]   ;;  %vm797_vm0 = vmmov 0   ;;  %s936_s16 = smov (!%p348_p3, %s697_s16), 1  ;;  %vm382_vm1 = vcmask 261120   ;;  %v639_v46 = vstv %s638_s26 }
   0xd   : > { %734 = vmatprep.subr.bf16.mxu0 %v796_v1  ;;  %742 = vmatprep.subr.bf16.mxu1 %v796_v1  ;;  %s702_s20 = sshll.u32 %s936_s16, 3  ;;  %v778_v5 = vld [vmem:[%s928_s4 + $0x8] sm:$0xff]   ;;  %v779_v6 = vld [vmem:[%s928_s4] sm:$0xff]   ;;  %vm642_vm2 = vcmask 31744  }
   0xe   : > { %735 = vmatpush3.bf16.msra.mxu0 %v776_v0  ;;  %738 = vmatprep.mubr.msk.bf16.mxu0 %vm797_vm0, %v796_v1  ;;  %s351_s23 = scalar_lea.vmem %s925_s1, %s702_s20  ;;  %v780_v7 = vld [vmem:[%s930_s6 + $0x8] sm:$0xff]   ;;  %v704_v8 = vld [vmem:[%s927_s3] ss:$0 sm:$0xff]  ;;  %s355_s29 = scalar_lea.vmem %s934_s10, %s702_s20 }
   0xf   : > { %736 = vmatprep.subr.bf16.mxu0 %v796_v1  ;;  %746 = vmatprep.mubr.msk.bf16.mxu1 %vm797_vm0, %v796_v1  ;;  %v357_v3 = vld [vmem:[%s351_s23] sm:$0xff]  ;;  %v782_v17 = vld [vmem:[%s932_s8 + $0x8] sm:$0xff]  }
  0x10   : > { %v358_v4 = vpack.c.bf16 %v357_v3, %v357_v3  ;;  %743 = vmatpush3.bf16.msra.mxu1 %v778_v5  ;;  %v781_v16 = vld [vmem:[%s930_s6] sm:$0xff]  }
  0x11   : > { %744 = vmatprep.subr.bf16.mxu1 %v796_v1  ;;  %v708_v18 = vld [vmem:[%s929_s5] ss:$0 sm:$0xff] }
  0x12   : > { %737 = vmatpush3.bf16.msra.mxu0 %v777_v2  ;;  %v783_v26 = vld [vmem:[%s932_s8] sm:$0xff]  }
  0x13   : > { %750 = vmatprep.subr.bf16.mxu0 %v796_v1  ;;  %v712_v27 = vld [vmem:[%s931_s7] ss:$0 sm:$0xff] }
  0x14   : > { %745 = vmatpush3.bf16.msra.mxu1 %v779_v6  ;;  %v716_v35 = vld [vmem:[%s933_s9] ss:$0 sm:$0xff] }
  0x15   : > { %739 = vmatmul.mubr.msk.bf16.vlgmr.msra.gmra.mxu0 %vm382_vm1, %v358_v4  ;;  %758 = vmatprep.subr.bf16.mxu1 %v796_v1 }
  0x16   : > { %754 = vmatprep.mubr.msk.bf16.mxu0 %vm797_vm0, %v796_v1  ;;  %751 = vmatpush3.bf16.msra.mxu0 %v780_v7 }
  0x17   : > { %752 = vmatprep.subr.bf16.mxu0 %v796_v1 }
  0x1a   : > { %753 = vmatpush3.bf16.msra.mxu0 %v781_v16 }
  0xd5   : > { %v420_v9 = vpop.f32.mrf.mxu0 }
  0xd6   : > { %v421_v10 = vadd.f32 %v704_v8, %v420_v9 }
  0xd7   : > { %v740_v11 = vpop.f32.mrf.mxu0 }
  0xd8   : > { %v426_v12 = vmax.f32 %v421_v10, 0.0 }
  0xd9   : > { %v423_v13 = vpop.f32.mrf.mxu0 }
  0xda   : > { %v427_v14 = vpack.c.bf16 %v426_v12, %v426_v12 }
  0xdb   : > { %v741_v15 = vpop.f32.mrf.mxu0 }
  0xdc   : > { %747 = vmatmul.mubr.msk.bf16.vlgmr.msra.gmra.mxu1 %vm382_vm1, %v427_v14 }
  0xdd   : > { %762 = vmatprep.mubr.msk.bf16.mxu1 %vm797_vm0, %v796_v1  ;;  %759 = vmatpush3.bf16.msra.mxu1 %v782_v17 }
  0xde   : > { %760 = vmatprep.subr.bf16.mxu1 %v796_v1 }
  0xe1   : > { %761 = vmatpush3.bf16.msra.mxu1 %v783_v26 }
 0x19c   : > { %v488_v19 = vpop.f32.mrf.mxu1 }
 0x19d   : > { %v489_v20 = vadd.f32 %v708_v18, %v488_v19 }
 0x19e   : > { %v748_v21 = vpop.f32.mrf.mxu1 }
 0x19f   : > { %v494_v22 = vmax.f32 %v489_v20, 0.0 }
 0x1a0   : > { %v491_v23 = vpop.f32.mrf.mxu1 }
 0x1a1   : > { %v495_v24 = vpack.c.bf16 %v494_v22, %v494_v22 }
 0x1a2   : > { %v749_v25 = vpop.f32.mrf.mxu1 }
 0x1a3   : > { %755 = vmatmul.mubr.msk.bf16.vlgmr.msra.gmra.mxu0 %vm382_vm1, %v495_v24 }
 0x263   : > { %v556_v28 = vpop.f32.mrf.mxu0 }
 0x264   : > { %v557_v29 = vadd.f32 %v712_v27, %v556_v28 }
 0x265   : > { %v756_v30 = vpop.f32.mrf.mxu0 }
 0x266   : > { %v562_v31 = vmax.f32 %v557_v29, 0.0 }
 0x267   : > { %v559_v32 = vpop.f32.mrf.mxu0 }
 0x268   : > { %v563_v33 = vpack.c.bf16 %v562_v31, %v562_v31 }
 0x269   : > { %v757_v34 = vpop.f32.mrf.mxu0 }
 0x26a   : > { %763 = vmatmul.mubr.msk.bf16.vlgmr.msra.gmra.mxu1 %vm382_vm1, %v563_v33 }
 0x32a   : > { %v624_v36 = vpop.f32.mrf.mxu1 }
 0x32b   : > { %v625_v37 = vadd.f32 %v716_v35, %v624_v36 }
 0x32c   : > { %v764_v38 = vpop.f32.mrf.mxu1 }
 0x32d   : > { %630 = vmax.xlane.f32.xlu0 %v625_v37 }
 0x32e   : > { %v627_v39 = vpop.f32.mrf.mxu1 }
 0x330   : > { %v765_v40 = vpop.f32.mrf.mxu1 }
 0x3b6   : > { %v631_v41 = vpop.xlane.xlu0 %630 }
 0x3b7   : > { %v632_v42 = vsub.f32 %v625_v37, %v631_v41 }
 0x3b9   : > { %v633_v43 = vmul.f32 1.442695, %v632_v42 }
 0x3bb   : > { %784 = vpow2.f32 %v633_v43 }
 0x3c8   : > { %v785_v44 = vpop.eup %784 }
 0x3c9   : > { %635 = vadd.xlane.f32.xlu0 %v785_v44 }
 0x452   : > { %v636_v45 = vpop.xlane.xlu0 %635 }
 0x453   : > { %786 = vrcp.f32 %v636_v45 }
 0x460   : > { %v787_v47 = vpop.eup %786 }
 0x461   : > { %v640_v48 = vmul.f32 %v787_v47, %v639_v46 }
 0x463   : > { %v641_v49 = vmul.f32 %v785_v44, %v640_v48 }
 0x465   : > { %643 = vst.msk [vmem:[%s355_s29] sm:$0xff] %vm642_vm2, %v641_v49 }
 0x466 PF: > { %s21_s15 = sadd.s32 1, %s794_s15  }
 0x467   : > { %p18_p4 = scmp.ge.s32.totalorder %s21_s15, 4  }
 0x469   :  { %20 = sbr.rel (!%p18_p4) target bundleno = 2 (0x2), region = 90 }

</bundles_post_ra>
